<compile_context>
chip_gen: v5e
topology: v5e:2x2
jax: 0.10.0
libtpu: 0.0.40
codegen_flags: <defaults>
</compile_context>

<pallas_src>
import functools

import jax
import jax.numpy as jnp
import numpy as np
from jax.experimental import pallas as pl
from jax.experimental.pallas import tpu as pltpu

_CP = pltpu.CompilerParams(dimension_semantics=("arbitrary",))


# --------------------------------------------------------------------------
# In-kernel helpers
# --------------------------------------------------------------------------

def _ln(x, g, b, eps=1e-5):
    mu = jnp.mean(x, axis=-1, keepdims=True)
    xc = x - mu
    var = jnp.mean(xc * xc, axis=-1, keepdims=True)
    return xc * jax.lax.rsqrt(var + eps) * g + b


# --------------------------------------------------------------------------
# Pallas kernels (each fuses a whole sub-graph, single grid step)
# --------------------------------------------------------------------------

def _patch_embed_kernel(p_ref, w_ref, b_ref, g_ref, beta_ref, o_ref):
    t = jnp.dot(p_ref[...], w_ref[...], preferred_element_type=jnp.float32)
    t = t + b_ref[...]
    o_ref[...] = _ln(t, g_ref[...], beta_ref[...])


def patch_embed(patches, w, b, g, beta):
    M, K = patches.shape
    C = w.shape[1]
    return pl.pallas_call(
        _patch_embed_kernel,
        out_shape=jax.ShapeDtypeStruct((M, C), jnp.float32),
        grid=(1,),
        in_specs=[pl.BlockSpec((M, K), lambda i: (0, 0)),
                  pl.BlockSpec((K, C), lambda i: (0, 0)),
                  pl.BlockSpec((1, C), lambda i: (0, 0)),
                  pl.BlockSpec((1, C), lambda i: (0, 0)),
                  pl.BlockSpec((1, C), lambda i: (0, 0))],
        out_specs=pl.BlockSpec((M, C), lambda i: (0, 0)),
        compiler_params=_CP,
    )(patches, w, b, g, beta)


def _attn_block_kernel(x_ref, g1_ref, b1_ref, wqkv_ref, bqkv_ref,
                       wproj_ref, bproj_ref, bias_ref, o_ref,
                       *, num_heads, head_dim, num_windows, win_tokens, scale):
    C = num_heads * head_dim
    BW, N, hd = num_windows, win_tokens, head_dim

    x = x_ref[...]                                       # (BW*N, C) pre-LN shortcut
    xn = _ln(x, g1_ref[...], b1_ref[...])
    qkv = jnp.dot(xn, wqkv_ref[...], preferred_element_type=jnp.float32)
    qkv = qkv + bqkv_ref[...]                            # (BW*N, 3C)
    bias = bias_ref[...]                                 # (nH, BW or 1, N, N)

    head_outs = []
    for h in range(num_heads):                           # static unroll (2 or 4)
        q = qkv[:, h * hd:(h + 1) * hd].reshape(BW, N, hd) * scale
        k = qkv[:, C + h * hd:C + (h + 1) * hd].reshape(BW, N, hd)
        v = qkv[:, 2 * C + h * hd:2 * C + (h + 1) * hd].reshape(BW, N, hd)
        s = jnp.einsum('bqd,bkd->bqk', q, k,
                       preferred_element_type=jnp.float32)      # (BW, N, N)
        s = s + bias[h]                                  # broadcasts (1,N,N) or (BW,N,N)
        s = s - jnp.max(s, axis=-1, keepdims=True)
        e = jnp.exp(s)
        p_attn = e * pl.reciprocal(jnp.sum(e, axis=-1, keepdims=True), approx=True)
        o_h = jnp.einsum('bqk,bkd->bqd', p_attn, v,
                         preferred_element_type=jnp.float32)    # (BW, N, hd)
        head_outs.append(o_h.reshape(BW * N, hd))

    attn = jnp.concatenate(head_outs, axis=-1)           # (BW*N, C)
    proj = jnp.dot(attn, wproj_ref[...], preferred_element_type=jnp.float32)
    proj = proj + bproj_ref[...]
    o_ref[...] = x + proj                                # fused residual


def attn_block(xw_flat, g1, b1, wqkv, bqkv, wproj, bproj, bias, *,
               num_heads, num_windows, win_tokens):
    M, C = xw_flat.shape
    head_dim = C // num_heads
    scale = head_dim ** -0.5
    nH, BWb, N, _ = bias.shape
    kernel = functools.partial(_attn_block_kernel, num_heads=num_heads,
                               head_dim=head_dim, num_windows=num_windows,
                               win_tokens=win_tokens, scale=scale)
    return pl.pallas_call(
        kernel,
        out_shape=jax.ShapeDtypeStruct((M, C), jnp.float32),
        grid=(1,),
        in_specs=[pl.BlockSpec((M, C), lambda i: (0, 0)),
                  pl.BlockSpec((1, C), lambda i: (0, 0)),
                  pl.BlockSpec((1, C), lambda i: (0, 0)),
                  pl.BlockSpec((C, 3 * C), lambda i: (0, 0)),
                  pl.BlockSpec((1, 3 * C), lambda i: (0, 0)),
                  pl.BlockSpec((C, C), lambda i: (0, 0)),
                  pl.BlockSpec((1, C), lambda i: (0, 0)),
                  pl.BlockSpec((nH, BWb, N, N), lambda i: (0, 0, 0, 0))],
        out_specs=pl.BlockSpec((M, C), lambda i: (0, 0)),
        compiler_params=_CP,
    )(xw_flat, g1, b1, wqkv, bqkv, wproj, bproj, bias)


def _mlp_block_kernel(x_ref, g_ref, b_ref, w1_ref, b1_ref, w2_ref, b2_ref, o_ref):
    x = x_ref[...]
    xn = _ln(x, g_ref[...], b_ref[...])
    h = jnp.dot(xn, w1_ref[...], preferred_element_type=jnp.float32) + b1_ref[...]
    # TODO(synk): timm uses exact (erf) GELU; tanh approximation used here for
    # robust Mosaic lowering.
    h = jax.nn.gelu(h, approximate=True)
    y = jnp.dot(h, w2_ref[...], preferred_element_type=jnp.float32) + b2_ref[...]
    o_ref[...] = x + y                                   # fused residual


def mlp_block(x_flat, g, b, w1, b1, w2, b2):
    M, C = x_flat.shape
    Ch = w1.shape[1]
    return pl.pallas_call(
        _mlp_block_kernel,
        out_shape=jax.ShapeDtypeStruct((M, C), jnp.float32),
        grid=(1,),
        in_specs=[pl.BlockSpec((M, C), lambda i: (0, 0)),
                  pl.BlockSpec((1, C), lambda i: (0, 0)),
                  pl.BlockSpec((1, C), lambda i: (0, 0)),
                  pl.BlockSpec((C, Ch), lambda i: (0, 0)),
                  pl.BlockSpec((1, Ch), lambda i: (0, 0)),
                  pl.BlockSpec((Ch, C), lambda i: (0, 0)),
                  pl.BlockSpec((1, C), lambda i: (0, 0))],
        out_specs=pl.BlockSpec((M, C), lambda i: (0, 0)),
        compiler_params=_CP,
    )(x_flat, g, b, w1, b1, w2, b2)


def _merge_kernel(x_ref, g_ref, b_ref, w_ref, o_ref):
    xn = _ln(x_ref[...], g_ref[...], b_ref[...])
    # timm PatchMerging reduction has bias=False.
    o_ref[...] = jnp.dot(xn, w_ref[...], preferred_element_type=jnp.float32)


def patch_merge(x_flat, g, b, w):
    M, K = x_flat.shape
    C = w.shape[1]
    return pl.pallas_call(
        _merge_kernel,
        out_shape=jax.ShapeDtypeStruct((M, C), jnp.float32),
        grid=(1,),
        in_specs=[pl.BlockSpec((M, K), lambda i: (0, 0)),
                  pl.BlockSpec((1, K), lambda i: (0, 0)),
                  pl.BlockSpec((1, K), lambda i: (0, 0)),
                  pl.BlockSpec((K, C), lambda i: (0, 0))],
        out_specs=pl.BlockSpec((M, C), lambda i: (0, 0)),
        compiler_params=_CP,
    )(x_flat, g, b, w)


def _head_kernel(x_ref, g_ref, b_ref, w_ref, hb_ref, o_ref, *, batch, tokens):
    x = x_ref[...]                                       # (B*L, C)
    xn = _ln(x, g_ref[...], b_ref[...])
    C = xn.shape[-1]
    pooled = jnp.mean(xn.reshape(batch, tokens, C), axis=1)          # (B, C)
    # Dropout(p=0.5) is identity at inference.
    o_ref[...] = jnp.dot(pooled, w_ref[...],
                         preferred_element_type=jnp.float32) + hb_ref[...]


def pool_head(x_flat, g, b, w_pad, b_pad, *, batch, tokens):
    M, C = x_flat.shape
    Np = w_pad.shape[1]
    kernel = functools.partial(_head_kernel, batch=batch, tokens=tokens)
    return pl.pallas_call(
        kernel,
        out_shape=jax.ShapeDtypeStruct((batch, Np), jnp.float32),
        grid=(1,),
        in_specs=[pl.BlockSpec((M, C), lambda i: (0, 0)),
                  pl.BlockSpec((1, C), lambda i: (0, 0)),
                  pl.BlockSpec((1, C), lambda i: (0, 0)),
                  pl.BlockSpec((C, Np), lambda i: (0, 0)),
                  pl.BlockSpec((1, Np), lambda i: (0, 0))],
        out_specs=pl.BlockSpec((batch, Np), lambda i: (0, 0)),
        compiler_params=_CP,
    )(x_flat, g, b, w_pad, b_pad)


# --------------------------------------------------------------------------
# Glue: window partitioning + static precomputation (prep-time only)
# --------------------------------------------------------------------------

def window_partition(x, ws):
    B, H, W, C = x.shape
    x = x.reshape(B, H // ws, ws, W // ws, ws, C)
    x = jnp.transpose(x, (0, 1, 3, 2, 4, 5))
    return x.reshape(-1, ws * ws, C)


def window_reverse(windows, ws, H, W, B):
    C = windows.shape[-1]
    x = windows.reshape(B, H // ws, W // ws, ws, ws, C)
    x = jnp.transpose(x, (0, 1, 3, 2, 4, 5))
    return x.reshape(B, H, W, C)


def relative_position_index(ws):
    coords = np.stack(np.meshgrid(np.arange(ws), np.arange(ws), indexing="ij"))
    cf = coords.reshape(2, -1)
    rel = cf[:, :, None] - cf[:, None, :]
    rel = rel.transpose(1, 2, 0).astype(np.int64)
    rel[:, :, 0] += ws - 1
    rel[:, :, 1] += ws - 1
    rel[:, :, 0] *= 2 * ws - 1
    return rel.sum(-1)                                   # [N, N]


def make_shift_mask(H, W, ws, shift):
    img = np.zeros((H, W), np.float32)
    cnt = 0
    for hs in (slice(0, -ws), slice(-ws, -shift), slice(-shift, None)):
        for wsl in (slice(0, -ws), slice(-ws, -shift), slice(-shift, None)):
            img[hs, wsl] = cnt
            cnt += 1
    mw = img.reshape(H // ws, ws, W // ws, ws).transpose(0, 2, 1, 3)
    mw = mw.reshape(-1, ws * ws)
    am = mw[:, None, :] - mw[:, :, None]
    return np.where(am != 0, -100.0, 0.0).astype(np.float32)        # [nW, N, N]


def _attn_bias(rpb_table, ws, num_heads, B, H, W, shift):
    """Precompute (rel-pos bias [+ shift mask]) per head, per window."""
    N = ws * ws
    idx = relative_position_index(ws).reshape(-1)
    rpb = jnp.transpose(rpb_table[idx].reshape(N, N, num_heads), (2, 0, 1))  # [nH,N,N]
    if shift > 0:
        # window_partition orders windows batch-major -> tile mask over batch.
        mask = jnp.asarray(np.tile(make_shift_mask(H, W, ws, shift), (B, 1, 1)))
        bias = rpb[:, None, :, :] + mask[None, :, :, :]              # [nH,B*nW,N,N]
    else:
        bias = rpb[:, None, :, :]                                    # [nH,1,N,N]
    return bias.astype(jnp.float32)


def prepare_derived(params, B, img_hw=(16, 16), patch=4, ws=2):
    """Static, per-model/per-batch derived constants (done once, not per forward)."""
    Hp, Wp = img_hw[0] // patch, img_hw[1] // patch
    H2, W2 = Hp // 2, Wp // 2
    C2, num_class = params["head_w"].shape
    pad_n = 128                                          # lane-dense head store
    head_w_pad = jnp.zeros((C2, pad_n), jnp.float32).at[:, :num_class].set(
        params["head_w"])
    head_b_pad = jnp.zeros((1, pad_n), jnp.float32).at[:, :num_class].set(
        params["head_b"])
    return dict(
        s1b0_bias=_attn_bias(params["s1b0"]["rpb_table"], ws, 2, B, Hp, Wp, 0),
        s1b1_bias=_attn_bias(params["s1b1"]["rpb_table"], ws, 2, B, Hp, Wp, ws // 2),
        s2b0_bias=_attn_bias(params["s2b0"]["rpb_table"], ws, 4, B, H2, W2, 0),
        head_w_pad=head_w_pad,
        head_b_pad=head_b_pad,
    )


# --------------------------------------------------------------------------
# Swin blocks / full forward
# --------------------------------------------------------------------------

def swin_block(x, p, bias, B, H, W, ws, shift, num_heads):
    _, L, C = x.shape
    N = ws * ws

    # LayerNorm1 commutes with roll / window partition (pure token permutations),
    # so it is fused inside the attention kernel, as is the residual add.
    xg = x.reshape(B, H, W, C)
    if shift > 0:
        xg = jnp.roll(xg, shift=(-shift, -shift), axis=(1, 2))
    xw = window_partition(xg, ws)                        # (B*nW, N, C)
    BW = xw.shape[0]
    xw_flat = xw.reshape(BW * N, C)

    yw_flat = attn_block(xw_flat, p["norm1_g"], p["norm1_b"],
                         p["qkv_w"], p["qkv_b"], p["proj_w"], p["proj_b"], bias,
                         num_heads=num_heads, num_windows=BW, win_tokens=N)

    yg = window_reverse(yw_flat.reshape(BW, N, C), ws, H, W, B)
    if shift > 0:
        yg = jnp.roll(yg, shift=(shift, shift), axis=(1, 2))
    x = yg.reshape(B, L, C)

    # Fused LayerNorm2 + fc1 + GELU + fc2 + residual (4C intermediate stays in VMEM).
    y = mlp_block(x.reshape(B * L, C), p["norm2_g"], p["norm2_b"],
                  p["fc1_w"], p["fc1_b"], p["fc2_w"], p["fc2_b"])
    return y.reshape(B, L, C)


def swin_forward(params, derived, x_nchw):
    B, Cin, H, W = x_nchw.shape
    x = jnp.transpose(x_nchw, (0, 2, 3, 1))              # NCHW -> NHWC
    patch = 4
    Hp, Wp = H // patch, W // patch

    # Patch embedding: non-overlapping 4x4 conv == matmul; fused with bias + LN.
    patches = x.reshape(B, Hp, patch, Wp, patch, Cin)
    patches = jnp.transpose(patches, (0, 1, 3, 2, 4, 5))
    patches = patches.reshape(B * Hp * Wp, patch * patch * Cin)
    tok = patch_embed(patches, params["patch_w"], params["patch_b"],
                      params["patch_norm_g"], params["patch_norm_b"])
    C = tok.shape[-1]
    x = tok.reshape(B, Hp * Wp, C)

    # Stage 1 (4x4 tokens, window_size 2, W-MSA then SW-MSA).
    ws = 2
    x = swin_block(x, params["s1b0"], derived["s1b0_bias"], B, Hp, Wp, ws, 0, 2)
    x = swin_block(x, params["s1b1"], derived["s1b1_bias"], B, Hp, Wp, ws, ws // 2, 2)

    # Patch merging (LN + bias-free linear, fused).
    xg = x.reshape(B, Hp, Wp, C)
    x0 = xg[:, 0::2, 0::2, :]
    x1 = xg[:, 1::2, 0::2, :]
    x2 = xg[:, 0::2, 1::2, :]
    x3 = xg[:, 1::2, 1::2, :]
    H2, W2 = Hp // 2, Wp // 2
    xm = jnp.concatenate([x0, x1, x2, x3], axis=-1).reshape(B * H2 * W2, 4 * C)
    xm = patch_merge(xm, params["merge_norm_g"], params["merge_norm_b"],
                     params["merge_w"])
    C2 = xm.shape[-1]
    x = xm.reshape(B, H2 * W2, C2)

    # Stage 2 (2x2 tokens == single window, no shift).
    x = swin_block(x, params["s2b0"], derived["s2b0_bias"], B, H2, W2, 2, 0, 4)

    # Final LN + global mean pool + head (fused; head weights lane-padded to 128).
    logits_pad = pool_head(x.reshape(B * H2 * W2, C2), params["norm_g"],
                           params["norm_b"], derived["head_w_pad"],
                           derived["head_b_pad"], batch=B, tokens=H2 * W2)
    num_class = params["head_w"].shape[1]
    return logits_pad[:, :num_class]


# --------------------------------------------------------------------------
# Deterministic parameter init (synthetic; no checkpoint load)
# --------------------------------------------------------------------------

def init_params(key, in_c=3, num_class=2, embed_dim=32, patch=4, ws=2):
    keys = iter(jax.random.split(key, 64))

    def w(shape, scale=0.02):
        return jax.random.normal(next(keys), shape, jnp.float32) * scale

    def block_params(C, nH):
        return dict(
            norm1_g=jnp.ones((1, C), jnp.float32),
            norm1_b=jnp.zeros((1, C), jnp.float32),
            qkv_w=w((C, 3 * C)), qkv_b=jnp.zeros((1, 3 * C), jnp.float32),
            proj_w=w((C, C)), proj_b=jnp.zeros((1, C), jnp.float32),
            rpb_table=w(((2 * ws - 1) ** 2, nH)),
            norm2_g=jnp.ones((1, C), jnp.float32),
            norm2_b=jnp.zeros((1, C), jnp.float32),
            fc1_w=w((C, 4 * C)), fc1_b=jnp.zeros((1, 4 * C), jnp.float32),
            fc2_w=w((4 * C, C)), fc2_b=jnp.zeros((1, C), jnp.float32),
        )

    C, C2 = embed_dim, 2 * embed_dim
    return dict(
        patch_w=w((patch * patch * in_c, C)),
        patch_b=jnp.zeros((1, C), jnp.float32),
        patch_norm_g=jnp.ones((1, C), jnp.float32),
        patch_norm_b=jnp.zeros((1, C), jnp.float32),
        s1b0=block_params(C, 2),
        s1b1=block_params(C, 2),
        merge_norm_g=jnp.ones((1, 4 * C), jnp.float32),
        merge_norm_b=jnp.zeros((1, 4 * C), jnp.float32),
        merge_w=w((4 * C, C2)),                          # bias=False (timm)
        s2b0=block_params(C2, 4),
        norm_g=jnp.ones((1, C2), jnp.float32),
        norm_b=jnp.zeros((1, C2), jnp.float32),
        head_w=w((C2, num_class)),
        head_b=jnp.zeros((1, num_class), jnp.float32),
    )


if __name__ == "__main__":
    key = jax.random.PRNGKey(0)
    pkey, xkey = jax.random.split(key)
    params = init_params(pkey, in_c=3, num_class=2)
    x = jax.random.normal(xkey, (2, 3, 16, 16), jnp.float32)   # NCHW, like PyTorch
    derived = prepare_derived(params, B=2, img_hw=(16, 16))    # static prep, once
    out = swin_forward(params, derived, x)
    out = jax.block_until_ready(out)
    assert out.shape == (2, 2) and out.dtype == jnp.float32
    print("KERNEL_OK")
</pallas_src>

<mosaic_0001>
module attributes {stable_mosaic.version = 11 : i64} {
  func.func @_patch_embed_kernel(%arg0: i32, %arg1: memref<32x48xf32, #tpu.memory_space<vmem>>, %arg2: memref<48x32xf32, #tpu.memory_space<vmem>>, %arg3: memref<1x32xf32, #tpu.memory_space<vmem>>, %arg4: memref<1x32xf32, #tpu.memory_space<vmem>>, %arg5: memref<1x32xf32, #tpu.memory_space<vmem>>, %arg6: memref<32x32xf32, #tpu.memory_space<vmem>>) attributes {dimension_semantics = [#tpu.dimension_semantics<arbitrary>], iteration_bounds = array<i64: 1>, scalar_prefetch = 0 : i64, scratch_operands = 0 : i64, tpu.core_type = #tpu.core_type<tc>, window_params = [{pipeline_mode = #tpu.pipeline_mode<synchronous>, transform_indices = @transform_0, window_bounds = array<i64: 32, 48>}, {pipeline_mode = #tpu.pipeline_mode<synchronous>, transform_indices = @transform_1, window_bounds = array<i64: 48, 32>}, {pipeline_mode = #tpu.pipeline_mode<synchronous>, transform_indices = @transform_2, window_bounds = array<i64: 1, 32>}, {pipeline_mode = #tpu.pipeline_mode<synchronous>, transform_indices = @transform_3, window_bounds = array<i64: 1, 32>}, {pipeline_mode = #tpu.pipeline_mode<synchronous>, transform_indices = @transform_4, window_bounds = array<i64: 1, 32>}, {pipeline_mode = #tpu.pipeline_mode<synchronous>, transform_indices = @transform_5, window_bounds = array<i64: 32, 32>}]} {
    %c0 = arith.constant 0 : index
    %c0_0 = arith.constant 0 : index
    %0 = vector.load %arg1[%c0, %c0_0] : memref<32x48xf32, #tpu.memory_space<vmem>>, vector<32x48xf32>
    %c0_1 = arith.constant 0 : index
    %c0_2 = arith.constant 0 : index
    %1 = vector.load %arg2[%c0_1, %c0_2] : memref<48x32xf32, #tpu.memory_space<vmem>>, vector<48x32xf32>
    %cst = arith.constant dense<0.000000e+00> : vector<32x32xf32>
    %2 = tpu.matmul %0, %1, %cst {dimension_numbers = #tpu.dot_dimension_numbers<[1], [0], [0], [1], [0, 0, 1, 1], [], []>} : vector<32x48xf32>, vector<48x32xf32>, vector<32x32xf32> -> vector<32x32xf32>
    %c0_3 = arith.constant 0 : index
    %c0_4 = arith.constant 0 : index
    %3 = vector.load %arg3[%c0_3, %c0_4] : memref<1x32xf32, #tpu.memory_space<vmem>>, vector<1x32xf32>
    %4 = vector.broadcast %3 : vector<1x32xf32> to vector<32x32xf32>
    %5 = arith.addf %2, %4 : vector<32x32xf32>
    %c0_5 = arith.constant 0 : index
    %c0_6 = arith.constant 0 : index
    %6 = vector.load %arg4[%c0_5, %c0_6] : memref<1x32xf32, #tpu.memory_space<vmem>>, vector<1x32xf32>
    %c0_7 = arith.constant 0 : index
    %c0_8 = arith.constant 0 : index
    %7 = vector.load %arg5[%c0_7, %c0_8] : memref<1x32xf32, #tpu.memory_space<vmem>>, vector<1x32xf32>
    %cst_9 = arith.constant dense<0.000000e+00> : vector<32xf32>
    %8 = vector.multi_reduction <add>, %5, %cst_9 [1] : vector<32x32xf32> to vector<32xf32>
    %9 = vector.shape_cast %8 : vector<32xf32> to vector<32x1xf32>
    %cst_10 = arith.constant 3.200000e+01 : f32
    %10 = vector.broadcast %cst_10 : f32 to vector<32x1xf32>
    %11 = arith.divf %9, %10 : vector<32x1xf32>
    %12 = vector.broadcast %11 : vector<32x1xf32> to vector<32x32xf32>
    %13 = arith.subf %5, %12 : vector<32x32xf32>
    %14 = arith.mulf %13, %13 : vector<32x32xf32>
    %cst_11 = arith.constant dense<0.000000e+00> : vector<32xf32>
    %15 = vector.multi_reduction <add>, %14, %cst_11 [1] : vector<32x32xf32> to vector<32xf32>
    %16 = vector.shape_cast %15 : vector<32xf32> to vector<32x1xf32>
    %cst_12 = arith.constant 3.200000e+01 : f32
    %17 = vector.broadcast %cst_12 : f32 to vector<32x1xf32>
    %18 = arith.divf %16, %17 : vector<32x1xf32>
    %cst_13 = arith.constant 9.99999974E-6 : f32
    %19 = vector.broadcast %cst_13 : f32 to vector<32x1xf32>
    %20 = arith.addf %18, %19 : vector<32x1xf32>
    %21 = math.rsqrt %20 : vector<32x1xf32>
    %22 = vector.broadcast %21 : vector<32x1xf32> to vector<32x32xf32>
    %23 = arith.mulf %13, %22 : vector<32x32xf32>
    %24 = vector.broadcast %6 : vector<1x32xf32> to vector<32x32xf32>
    %25 = arith.mulf %23, %24 : vector<32x32xf32>
    %26 = vector.broadcast %7 : vector<1x32xf32> to vector<32x32xf32>
    %27 = arith.addf %25, %26 : vector<32x32xf32>
    %c0_14 = arith.constant 0 : index
    %c0_15 = arith.constant 0 : index
    %28 = vector.load %arg6[%c0_14, %c0_15] : memref<32x32xf32, #tpu.memory_space<vmem>>, vector<32x32xf32>
    tpu.vector_store %arg6[%c0_14, %c0_15], %27 {strides = array<i32>} : memref<32x32xf32, #tpu.memory_space<vmem>>, vector<32x32xf32>,
    return
  }
  func.func @transform_0(%arg0: i32) -> (i32, i32) {
    %c0_i32 = arith.constant 0 : i32
    %c0_i32_0 = arith.constant 0 : i32
    %c0_i32_1 = arith.constant 0 : i32
    return %c0_i32, %c0_i32_0 : i32, i32
  }
  func.func @transform_1(%arg0: i32) -> (i32, i32) {
    %c0_i32 = arith.constant 0 : i32
    %c0_i32_0 = arith.constant 0 : i32
    %c0_i32_1 = arith.constant 0 : i32
    return %c0_i32, %c0_i32_0 : i32, i32
  }
  func.func @transform_2(%arg0: i32) -> (i32, i32) {
    %c0_i32 = arith.constant 0 : i32
    %c0_i32_0 = arith.constant 0 : i32
    %c0_i32_1 = arith.constant 0 : i32
    return %c0_i32, %c0_i32_0 : i32, i32
  }
  func.func @transform_3(%arg0: i32) -> (i32, i32) {
    %c0_i32 = arith.constant 0 : i32
    %c0_i32_0 = arith.constant 0 : i32
    %c0_i32_1 = arith.constant 0 : i32
    return %c0_i32, %c0_i32_0 : i32, i32
  }
  func.func @transform_4(%arg0: i32) -> (i32, i32) {
    %c0_i32 = arith.constant 0 : i32
    %c0_i32_0 = arith.constant 0 : i32
    %c0_i32_1 = arith.constant 0 : i32
    return %c0_i32, %c0_i32_0 : i32, i32
  }
  func.func @transform_5(%arg0: i32) -> (i32, i32) {
    %c0_i32 = arith.constant 0 : i32
    %c0_i32_0 = arith.constant 0 : i32
    %c0_i32_1 = arith.constant 0 : i32
    return %c0_i32, %c0_i32_0 : i32, i32
  }
}

</mosaic_0001>

<bundles_post_ra>
// kernel: tpu_custom_call.1
= control target key start
LH: loop header
LB: loop body
LE: loop exit
PB: predicated region body
PF: predicated region fallthrough
CT: control target
= control target key end

     0   :  { %s379_s0 = inlined_call_operand.vmem [shape: f32[32,48], index: 0, kind: input, shape index: {}]   ;;  %s380_s1 = inlined_call_operand.vmem [shape: f32[48,32], index: 1, kind: input, shape index: {}]   ;;  %s381_s2 = inlined_call_operand.vmem [shape: f32[1,32], index: 2, kind: input, shape index: {}]   ;;  %s382_s3 = inlined_call_operand.vmem [shape: f32[1,32], index: 3, kind: input, shape index: {}]   ;;  %s383_s4 = inlined_call_operand.vmem [shape: f32[1,32], index: 4, kind: input, shape index: {}]   ;;  %s384_s5 = inlined_call_operand.hbm [shape: f32[32,32], index: 5, kind: output, shape index: {}]  }
   0x1   :  { %v30_v0 = vld [vmem:[%s380_s1 + $0x28] sm:$0xff]  ;;  %v29_v1 = vld [vmem:[%s380_s1 + $0x20] sm:$0xff]  ;;  %v28_v2 = vld [vmem:[%s380_s1 + $0x18] sm:$0xff] }
   0x2   :  { %58 = vmatpush.msra.mxu0 %v30_v0  ;;  %216 = vmatpush.msra.mxu2 %v30_v0  ;;  %v27_v3 = vld [vmem:[%s380_s1 + $0x10] sm:$0xff] }
   0x3   :  { %215 = vmatpush.msra.mxu1 %v30_v0  ;;  %217 = vmatpush.msra.mxu3 %v30_v0 }
   0x4   :  { %59 = vmatpush.msra.mxu0 %v29_v1  ;;  %219 = vmatpush.msra.mxu2 %v29_v1 }
   0x5   :  { %218 = vmatpush.msra.mxu1 %v29_v1  ;;  %220 = vmatpush.msra.mxu3 %v29_v1 }
   0x6   :  { %10 = vsyncpa [#allocation3], 0  ;;  %60 = vmatpush.msra.mxu0 %v28_v2  ;;  %222 = vmatpush.msra.mxu2 %v28_v2  ;;  %v26_v4 = vld [vmem:[%s380_s1 + $0x8] sm:$0xff]  ;;  %v25_v5 = vld [vmem:[%s380_s1] sm:$0xff]  ;;  %vm35_vm0 = vcmask 392192   ;;  %vm79_vm1 = vcmask 261120  }
   0x7   :  { %221 = vmatpush.msra.mxu1 %v28_v2  ;;  %223 = vmatpush.msra.mxu3 %v28_v2  ;;  %v21_v6 = vld [vmem:[%s379_s0] sm:$0xff]  ;;  %v23_v7 = vld [vmem:[%s379_s0 + $0x10] sm:$0xff]  ;;  %v22_v8 = vld [vmem:[%s379_s0 + $0x8] sm:$0xff]  ;;  %v276_v23 = vmov 32.0   ;;  %s199_s18 = sshll.u32 %s384_s5, 4  ;;  %s278_s19 = smov 128   ;;  %s200_s18 = int_to_ptr.hbm [resolvable:$true] %s199_s18 }
   0x8   :  { %61 = vmatpush.msra.mxu0 %v27_v3  ;;  %225 = vmatpush.msra.mxu2 %v27_v3  ;;  %v24_v9 = vld [vmem:[%s379_s0 + $0x18] sm:$0xff]  ;;  %v237_v10 = vld [vmem:[%s381_s2] ss:$0 sm:$0xff]  ;;  %240 = vrcp.f32 %v276_v23  ;;  %s279_s20 = smov 8  }
   0x9   :  { %224 = vmatpush.msra.mxu1 %v27_v3  ;;  %226 = vmatpush.msra.mxu3 %v27_v3 }
   0xa   :  { %62 = vmatpush.msra.mxu0 %v26_v4  ;;  %228 = vmatpush.msra.mxu2 %v26_v4 }
   0xb   :  { %227 = vmatpush.msra.mxu1 %v26_v4  ;;  %229 = vmatpush.msra.mxu3 %v26_v4 }
   0xc   :  { %63 = vmatpush.msra.mxu0 %v25_v5  ;;  %231 = vmatpush.msra.mxu2 %v25_v5 }
   0xd   :  { %211 = vmatmul.msk.f32.vlgmr.msra.gmra.mxu0 %vm35_vm0, %v21_v6  ;;  %213 = vmatmul.msk.f32.vlgmr.msra.gmra.mxu2 %vm35_vm0, %v23_v7 }
   0xe   :  { %230 = vmatpush.msra.mxu1 %v25_v5  ;;  %232 = vmatpush.msra.mxu3 %v25_v5  ;;  %v241_v24 = vpop.eup %240 }
   0xf   :  { %212 = vmatmul.msk.f32.vlgmr.msra.gmra.mxu1 %vm35_vm0, %v22_v8  ;;  %214 = vmatmul.msk.f32.vlgmr.msra.gmra.mxu3 %vm35_vm0, %v24_v9  ;;  %v93_v25 = vmul.f32 32.0, %v241_v24  ;;  %vm97_vm2 = vweird.f32 %v241_v24  ;;  %v238_v9 = vld [vmem:[%s382_s3] ss:$0 sm:$0xff]  ;;  %s277_s3 = smov [#allocation2]  }
  0x11   :  { %v94_v26 = vsub.f32 1.0, %v93_v25 }
  0x13   :  { %v95_v27 = vmul.f32 %v241_v24, %v94_v26 }
  0x15   :  { %v96_v28 = vadd.f32 %v241_v24, %v95_v27 }
  0x17   :  { %v98_v29 = vsel %vm97_vm2, %v241_v24, %v96_v28 }
  0x8a   :  { %v65_v11 = vpop.f32.mrf.mxu0 }
  0x8b   :  { %v66_v12 = vadd.f32 %v237_v10, %v65_v11 }
  0x8c   :  { %v68_v13 = vpop.f32.mrf.mxu1 }
  0x8d   :  { %v80_v14 = vsel %vm79_vm1, %v66_v12, 0.0  ;;  %v69_v15 = vadd.f32 %v237_v10, %v68_v13  ;;  %v239_v13 = vld [vmem:[%s383_s4] ss:$0 sm:$0xff]  ;;  %s197_s4 = sshll.u32 %s277_s3, 4  ;;  %s198_s4 = int_to_ptr.vmem [resolvable:$true] %s197_s4 }
  0x8e   :  { %81 = vadd.xlane.f32.xlu0 %v80_v14 }
  0x8f   :  { %v83_v20 = vsel %vm79_vm1, %v69_v15, 0.0 }
  0x90   :  { %v71_v16 = vpop.f32.mrf.mxu2 }
  0x91   :  { %v72_v17 = vadd.f32 %v237_v10, %v71_v16 }
  0x92   :  { %v74_v18 = vpop.f32.mrf.mxu3 }
  0x93   :  { %v86_v19 = vsel %vm79_vm1, %v72_v17, 0.0  ;;  %v75_v21 = vadd.f32 %v237_v10, %v74_v18 }
  0x94   :  { %87 = vadd.xlane.f32.xlu1 %v86_v19 }
  0x95   :  { %v89_v22 = vsel %vm79_vm1, %v75_v21, 0.0 }
  0x96   :  { %84 = vadd.xlane.f32.xlu0 %v83_v20 }
  0x9c   :  { %90 = vadd.xlane.f32.xlu1 %v89_v22 }
 0x101   :  { %v82_v30 = vpop.xlane.xlu0 %81 }
 0x102   :  { %v99_v31 = vmul.f32 %v98_v29, %v82_v30 }
 0x104   :  { %v103_v32 = vsub.f32 %v66_v12, %v99_v31 }
 0x106   :  { %v107_v33 = vmul.f32 %v103_v32, %v103_v32 }
 0x107   :  { %v88_v34 = vpop.xlane.xlu1 %87 }
 0x108   :  { %v101_v35 = vmul.f32 %v98_v29, %v88_v34  ;;  %v111_v36 = vsel %vm79_vm1, %v107_v33, 0.0 }
 0x109   :  { %112 = vadd.xlane.f32.xlu2 %v111_v36  ;;  %v85_v37 = vpop.xlane.xlu0 %84 }
 0x10a   :  { %v348_v38 = vsub.f32 %v72_v17, %v101_v35  ;;  %v100_v39 = vmul.f32 %v98_v29, %v85_v37 }
 0x10c   :  { %v350_v40 = vsub.f32 %v69_v15, %v100_v39  ;;  %v109_v41 = vmul.f32 %v348_v38, %v348_v38 }
 0x10e   :  { %v117_v42 = vsel %vm79_vm1, %v109_v41, 0.0  ;;  %v108_v43 = vmul.f32 %v350_v40, %v350_v40 }
 0x10f   :  { %v91_v44 = vpop.xlane.xlu1 %90  ;;  %118 = vadd.xlane.f32.xlu0 %v117_v42 }
 0x110   :  { %v102_v45 = vmul.f32 %v98_v29, %v91_v44  ;;  %v114_v46 = vsel %vm79_vm1, %v108_v43, 0.0 }
 0x111   :  { %115 = vadd.xlane.f32.xlu2 %v114_v46 }
 0x112   :  { %v358_v47 = vsub.f32 %v75_v21, %v102_v45 }
 0x114   :  { %v110_v48 = vmul.f32 %v358_v47, %v358_v47 }
 0x116   :  { %v120_v49 = vsel %vm79_vm1, %v110_v48, 0.0 }
 0x117   :  { %121 = vadd.xlane.f32.xlu1 %v120_v49 }
 0x17c   :  { %v113_v50 = vpop.xlane.xlu2 %112 }
 0x17d   :  { %v123_v51 = vmul.f32 %v113_v50, %v98_v29 }
 0x17f   :  { %v127_v52 = vadd.f32 1e-05, %v123_v51 }
 0x181   :  { %242 = vrsqrt.f32 %v127_v52  ;;  %vm137_vm4 = vweird.f32 %v127_v52 }
 0x182   :  { %v119_v53 = vpop.xlane.xlu0 %118 }
 0x183   :  { %v125_v54 = vmul.f32 %v119_v53, %v98_v29 }
 0x184   :  { %v116_v55 = vpop.xlane.xlu2 %115 }
 0x185   :  { %v129_v56 = vadd.f32 1e-05, %v125_v54  ;;  %v124_v57 = vmul.f32 %v116_v55, %v98_v29 }
 0x187   :  { %v243_v58 = vpop.eup %242  ;;  %244 = vrsqrt.f32 %v129_v56  ;;  %v128_v59 = vadd.f32 1e-05, %v124_v57  ;;  %vm157_vm7 = vweird.f32 %v129_v56 }
 0x188   :  { %v132_v60 = vmul.f32 %v243_v58, %v127_v52  ;;  %vm138_vm3 = vweird.f32 %v243_v58 }
 0x189   :  { %246 = vrsqrt.f32 %v128_v59  ;;  %vm139_vm5 = vmor %vm137_vm4, %vm138_vm3  ;;  %vm147_vm10 = vweird.f32 %v128_v59 }
 0x18a   :  { %v133_v61 = vmul.f32 %v243_v58, %v132_v60  ;;  %v122_v62 = vpop.xlane.xlu1 %121 }
 0x18b   :  { %v126_v63 = vmul.f32 %v122_v62, %v98_v29 }
 0x18c   :  { %v134_v0 = vmul.f32 0.5, %v133_v61 }
 0x18d   :  { %v245_v1 = vpop.eup %244  ;;  %v130_v2 = vadd.f32 1e-05, %v126_v63 }
 0x18e   :  { %v135_v3 = vsub.f32 1.5, %v134_v0  ;;  %v152_v4 = vmul.f32 %v245_v1, %v129_v56  ;;  %vm158_vm6 = vweird.f32 %v245_v1 }
 0x18f   :  { %v247_v5 = vpop.eup %246  ;;  %248 = vrsqrt.f32 %v130_v2  ;;  %vm159_vm9 = vmor %vm157_vm7, %vm158_vm6  ;;  %vm167_vm13 = vweird.f32 %v130_v2 }
 0x190   :  { %v136_v6 = vmul.f32 %v243_v58, %v135_v3  ;;  %v153_v7 = vmul.f32 %v245_v1, %v152_v4  ;;  %v142_v8 = vmul.f32 %v247_v5, %v128_v59  ;;  %vm148_vm8 = vweird.f32 %v247_v5 }
 0x191   :  { %vm149_vm11 = vmor %vm147_vm10, %vm148_vm8 }
 0x192   :  { %v140_v10 = vsel %vm139_vm5, %v243_v58, %v136_v6  ;;  %v154_v11 = vmul.f32 0.5, %v153_v7  ;;  %v143_v12 = vmul.f32 %v247_v5, %v142_v8 }
 0x193   :  { %v171_v14 = vmul.f32 %v140_v10, %v103_v32 }
 0x194   :  { %v155_v15 = vsub.f32 1.5, %v154_v11  ;;  %v144_v16 = vmul.f32 0.5, %v143_v12 }
 0x195   :  { %v249_v17 = vpop.eup %248  ;;  %v178_v18 = vmul.f32 %v238_v9, %v171_v14 }
 0x196   :  { %v156_v19 = vmul.f32 %v245_v1, %v155_v15  ;;  %v145_v20 = vsub.f32 1.5, %v144_v16  ;;  %v162_v21 = vmul.f32 %v249_v17, %v130_v2  ;;  %vm168_vm12 = vweird.f32 %v249_v17 }
 0x197   :  { %v185_v22 = vadd.f32 %v239_v13, %v178_v18  ;;  %vm169_vm14 = vmor %vm167_vm13, %vm168_vm12 }
 0x198   :  { %v160_v23 = vsel %vm159_vm9, %v245_v1, %v156_v19  ;;  %v146_v24 = vmul.f32 %v247_v5, %v145_v20  ;;  %v163_v25 = vmul.f32 %v249_v17, %v162_v21 }
 0x199   :  { %189 = vst.msk [vmem:[#allocation2] sm:$0xff] %vm79_vm1, %v185_v22  ;;  %v173_v26 = vmul.f32 %v160_v23, %v348_v38 }
 0x19a   :  { %v150_v27 = vsel %vm149_vm11, %v247_v5, %v146_v24  ;;  %v164_v28 = vmul.f32 0.5, %v163_v25 }
 0x19b   :  { %v180_v29 = vmul.f32 %v238_v9, %v173_v26  ;;  %v172_v30 = vmul.f32 %v150_v27, %v350_v40 }
 0x19c   :  { %v165_v31 = vsub.f32 1.5, %v164_v28 }
 0x19d   :  { %v187_v32 = vadd.f32 %v239_v13, %v180_v29  ;;  %v179_v33 = vmul.f32 %v238_v9, %v172_v30 }
 0x19e   :  { %v166_v34 = vmul.f32 %v249_v17, %v165_v31 }
 0x19f   :  { %191 = vst.msk [vmem:[#allocation2 + $0x10] sm:$0xff] %vm79_vm1, %v187_v32  ;;  %v186_v35 = vadd.f32 %v239_v13, %v179_v33 }
 0x1a0   :  { %v170_v36 = vsel %vm169_vm14, %v249_v17, %v166_v34 }
 0x1a1   :  { %190 = vst.msk [vmem:[#allocation2 + $0x8] sm:$0xff] %vm79_vm1, %v186_v35  ;;  %v174_v37 = vmul.f32 %v170_v36, %v358_v47 }
 0x1a3   :  { %v181_v38 = vmul.f32 %v238_v9, %v174_v37 }
 0x1a5   :  { %v188_v39 = vadd.f32 %v239_v13, %v181_v38 }
 0x1a7   :  { %192 = vst.msk [vmem:[#allocation2 + $0x18] sm:$0xff] %vm79_vm1, %v188_v39 }
 0x1a8   :  { %205 = dma.vmem_to_hbm [thread:$0]  %s198_s4, 512, %s200_s18, [#allocation3], %s278_s19, %s278_s19, %s279_s20  }
 0x1a9   :  { %274 = dma.done.wait [#allocation3], 512  }
 0x1aa   :  { %275 = vsyncadd [#allocation3], 4294966784 }
 0x1ab   :  { %210 = vsyncpa [#allocation3], 1 }

</bundles_post_ra>
